<compile_context>
chip_gen: v6e
topology: v6e:2x2x1
jax: 0.10.0
libtpu: 0.0.40
codegen_flags: <defaults>
</compile_context>

<pallas_src>
import math

import jax
import jax.numpy as jnp
from jax.experimental import pallas as pl
from jax.experimental.pallas import tpu as pltpu


_SQRT_2_OVER_PI = math.sqrt(2.0 / math.pi)


def _gelu_tanh(x):
    # PyTorch nn.GELU(approximate='tanh'), computed in f32.
    return 0.5 * x * (1.0 + jnp.tanh(_SQRT_2_OVER_PI * (x + 0.044715 * x * x * x)))


def _round_up(x, m):
    return ((x + m - 1) // m) * m


def _pad2d(a, rows, cols):
    pr, pc = rows - a.shape[0], cols - a.shape[1]
    if pr or pc:
        a = jnp.pad(a, ((0, pr), (0, pc)))
    return a


def _pick_tile(dim, target=512):
    for t in (target, 256, 128):
        if dim % t == 0:
            return min(t, dim)
    return dim  # dim is always a multiple of 128 here


# ----------------------------------------------------------------------------
# Kernels
# ----------------------------------------------------------------------------
def _mlp_kernel(x_ref, w1_ref, b1_ref, w2_ref, b2_ref, o_ref, acc_ref):
    """Grid = (token tiles, mlp_dim chunks).  acc accumulates linear2 over K."""
    k = pl.program_id(1)

    @pl.when(k == 0)
    def _():
        acc_ref[...] = jnp.zeros_like(acc_ref)

    x = x_ref[...]
    h = jnp.dot(x, w1_ref[...], preferred_element_type=jnp.float32) + b1_ref[...]
    h = _gelu_tanh(h)  # elementwise -> exact per-chunk
    acc_ref[...] += jnp.dot(h.astype(x.dtype), w2_ref[...],
                            preferred_element_type=jnp.float32)

    @pl.when(k == pl.num_programs(1) - 1)
    def _():
        o_ref[...] = (acc_ref[...] + b2_ref[...]).astype(o_ref.dtype)


def _mlp_glu_kernel(x_ref, w1_ref, b1_ref, wg_ref, bg_ref, w2_ref, b2_ref,
                    o_ref, h_ref, acc_ref):
    """Grid = (token tiles, glu output-column tiles == linear2 K tiles).

    GELU hidden is computed once per token tile (at j == 0) into h_ref; the
    GLU product and linear2 contribution are produced tile-by-tile so only a
    single full-width f32 temporary is ever live.
    """
    j = pl.program_id(1)
    tj = wg_ref.shape[1]

    @pl.when(j == 0)
    def _():
        x = x_ref[...]
        h = jnp.dot(x, w1_ref[...], preferred_element_type=jnp.float32) + b1_ref[...]
        h_ref[...] = _gelu_tanh(h)
        acc_ref[...] = jnp.zeros_like(acc_ref)

    h_full = h_ref[...]
    y = jnp.dot(h_full.astype(x_ref.dtype), wg_ref[...],
                preferred_element_type=jnp.float32) + bg_ref[...]
    start = pl.multiple_of(j * tj, 128)
    hz = h_ref[:, pl.ds(start, tj)] * y
    acc_ref[...] += jnp.dot(hz.astype(x_ref.dtype), w2_ref[...],
                            preferred_element_type=jnp.float32)

    @pl.when(j == pl.num_programs(1) - 1)
    def _():
        o_ref[...] = (acc_ref[...] + b2_ref[...]).astype(o_ref.dtype)


# ----------------------------------------------------------------------------
# Params / wrapper
# ----------------------------------------------------------------------------
def init_mlp_params(key, width, mlp_dim=None, use_glu=False, dtype=jnp.float32):
    """Deterministic params matching MlpBlock.reset_parameters.

    Weights stored as [in_features, out_features] (transpose of torch layout).
    """
    mlp_dim = mlp_dim or 4 * width
    keys = jax.random.split(key, 6)

    def xavier_uniform(k, fan_in, fan_out):
        limit = math.sqrt(6.0 / (fan_in + fan_out))
        return jax.random.uniform(k, (fan_in, fan_out), dtype, -limit, limit)

    params = {
        "w1": xavier_uniform(keys[0], width, mlp_dim),
        "b1": 1e-6 * jax.random.normal(keys[1], (mlp_dim,), dtype),
        "w2": xavier_uniform(keys[2], mlp_dim, width),
        "b2": 1e-6 * jax.random.normal(keys[3], (width,), dtype),
    }
    if use_glu:
        params["wg"] = xavier_uniform(keys[4], mlp_dim, mlp_dim)
        params["bg"] = 1e-6 * jax.random.normal(keys[5], (mlp_dim,), dtype)
    return params


def mlp_block(x, params, use_glu=False, dropout_rate=0.0, token_tile=256):
    """x: [batch, seq, width] -> [batch, seq, width]."""
    # TODO(synk): dropout with rate > 0 would need pltpu.prng_* inside the
    # kernel; inference path (rate == 0) only.
    assert dropout_rate == 0.0, "only dropout_rate=0.0 (inference) supported"

    batch, seq, width = x.shape
    mlp_dim = params["w1"].shape[1]
    n = batch * seq
    dtype = x.dtype

    # Pad everything so lanes (last dim) are 128-dense and token tiles are
    # sublane (8) aligned.  Zero padding is exact: gelu(0)=0 and padded weight
    # rows/cols are zero, so padded lanes contribute nothing.
    width_p = _round_up(width, 128)
    mlp_p = _round_up(mlp_dim, 128)
    n8 = _round_up(n, 8)
    tm = min(token_tile, n8)
    n_p = _round_up(n8, tm)

    x2 = _pad2d(x.reshape(n, width), n_p, width_p)
    w1 = _pad2d(params["w1"], width_p, mlp_p)
    b1 = _pad2d(params["b1"].reshape(1, -1), 1, mlp_p)
    w2 = _pad2d(params["w2"], mlp_p, width_p)
    b2 = _pad2d(params["b2"].reshape(1, -1), 1, width_p)

    fp = 4  # budget everything as f32 (conservative)
    io_bytes = 2 * 2 * tm * width_p * fp          # double-buffered in + out tiles

    if use_glu:
        tj = _pick_tile(mlp_p, 512)
        wg = _pad2d(params["wg"], mlp_p, mlp_p)
        bg = _pad2d(params["bg"].reshape(1, -1), 1, mlp_p)
        grid = (n_p // tm, mlp_p // tj)
        kernel = _mlp_glu_kernel
        operands = (x2, w1, b1, wg, bg, w2, b2)
        in_specs = [
            pl.BlockSpec((tm, width_p), lambda i, j: (i, 0)),
            pl.BlockSpec((width_p, mlp_p), lambda i, j: (0, 0)),   # resident
            pl.BlockSpec((1, mlp_p), lambda i, j: (0, 0)),         # resident
            pl.BlockSpec((mlp_p, tj), lambda i, j: (0, j)),
            pl.BlockSpec((1, tj), lambda i, j: (0, j)),
            pl.BlockSpec((tj, width_p), lambda i, j: (j, 0)),
            pl.BlockSpec((1, width_p), lambda i, j: (0, 0)),       # resident
        ]
        out_spec = pl.BlockSpec((tm, width_p), lambda i, j: (i, 0))
        scratch = [pltpu.VMEM((tm, mlp_p), jnp.float32),
                   pltpu.VMEM((tm, width_p), jnp.float32)]
        weight_bytes = 2 * (width_p * mlp_p + mlp_p + mlp_p * tj + tj
                            + tj * width_p + width_p) * fp
        scratch_bytes = (tm * mlp_p + tm * width_p) * 4
        extra_flops = 2 * n * mlp_dim * mlp_dim
    else:
        tk = _pick_tile(mlp_p, 512)
        grid = (n_p // tm, mlp_p // tk)
        kernel = _mlp_kernel
        operands = (x2, w1, b1, w2, b2)
        in_specs = [
            pl.BlockSpec((tm, width_p), lambda i, k: (i, 0)),
            pl.BlockSpec((width_p, tk), lambda i, k: (0, k)),
            pl.BlockSpec((1, tk), lambda i, k: (0, k)),
            pl.BlockSpec((tk, width_p), lambda i, k: (k, 0)),
            pl.BlockSpec((1, width_p), lambda i, k: (0, 0)),       # resident
        ]
        out_spec = pl.BlockSpec((tm, width_p), lambda i, k: (i, 0))
        scratch = [pltpu.VMEM((tm, width_p), jnp.float32)]
        weight_bytes = 2 * (width_p * tk + tk + tk * width_p + width_p) * fp
        scratch_bytes = tm * width_p * 4
        extra_flops = 0

    vmem_limit = int(min(max(int(1.3 * (io_bytes + weight_bytes + scratch_bytes)),
                             32 * 2**20),
                         64 * 2**20))

    flops = 4 * n * width * mlp_dim + extra_flops
    transcendentals = n * mlp_dim  # one tanh per hidden activation
    bytes_accessed = int(sum(int(a.size) * a.dtype.itemsize for a in operands)
                         + n_p * width_p * jnp.dtype(dtype).itemsize)

    out = pl.pallas_call(
        kernel,
        out_shape=jax.ShapeDtypeStruct((n_p, width_p), dtype),
        grid_spec=pltpu.PrefetchScalarGridSpec(
            num_scalar_prefetch=0,
            grid=grid,
            in_specs=in_specs,
            out_specs=out_spec,
            scratch_shapes=scratch,
        ),
        compiler_params=pltpu.CompilerParams(
            dimension_semantics=("parallel", "arbitrary"),
            vmem_limit_bytes=vmem_limit,
        ),
        cost_estimate=pl.CostEstimate(
            flops=flops,
            transcendentals=transcendentals,
            bytes_accessed=bytes_accessed,
        ),
    )(*operands)

    return out[:n, :width].reshape(batch, seq, width)


def mlp_block_ref(x, params, use_glu=False):
    """Pure-JAX reference for correctness checking."""
    h = jnp.dot(x, params["w1"]) + params["b1"]
    h = _gelu_tanh(h)
    if use_glu:
        y = jnp.dot(h, params["wg"]) + params["bg"]
        h = h * y
    return jnp.dot(h, params["w2"]) + params["b2"]


if __name__ == "__main__":
    key = jax.random.PRNGKey(0)
    k_x, k_p, k_pg, k_x2, k_p2, k_pg2 = jax.random.split(key, 6)

    # ---- small config matching the module defaults (mlp_dim = 4 * width) ----
    batch, seq, width = 2, 8, 32
    x = jax.random.normal(k_x, (batch, seq, width), jnp.float32)

    params = init_mlp_params(k_p, width)
    out = jax.block_until_ready(mlp_block(x, params, use_glu=False))
    ref = mlp_block_ref(x, params, use_glu=False)
    assert out.shape == (batch, seq, width)
    assert jnp.allclose(out, ref, atol=1e-4, rtol=1e-4)

    params_glu = init_mlp_params(k_pg, width, use_glu=True)
    out_glu = jax.block_until_ready(mlp_block(x, params_glu, use_glu=True))
    ref_glu = mlp_block_ref(x, params_glu, use_glu=True)
    assert jnp.allclose(out_glu, ref_glu, atol=1e-4, rtol=1e-4)

    # ---- larger config exercising the multi-tile (token x hidden) grid ----
    batch2, seq2, width2, mlp2 = 2, 160, 128, 1024   # grid = (2, 2)
    x2 = jax.random.normal(k_x2, (batch2, seq2, width2), jnp.float32)

    params2 = init_mlp_params(k_p2, width2, mlp_dim=mlp2)
    out2 = jax.block_until_ready(mlp_block(x2, params2, use_glu=False))
    ref2 = mlp_block_ref(x2, params2, use_glu=False)
    assert jnp.allclose(out2, ref2, atol=1e-4, rtol=1e-4)

    params2_glu = init_mlp_params(k_pg2, width2, mlp_dim=mlp2, use_glu=True)
    out2_glu = jax.block_until_ready(mlp_block(x2, params2_glu, use_glu=True))
    ref2_glu = mlp_block_ref(x2, params2_glu, use_glu=True)
    assert jnp.allclose(out2_glu, ref2_glu, atol=1e-4, rtol=1e-4)

    print("KERNEL_OK")
</pallas_src>

<mosaic_0001>
module attributes {stable_mosaic.version = 11 : i64} {
  func.func @_mlp_kernel(%arg0: i32, %arg1: i32, %arg2: memref<16x128xf32, #tpu.memory_space<vmem>>, %arg3: memref<128x128xf32, #tpu.memory_space<vmem>>, %arg4: memref<1x128xf32, #tpu.memory_space<vmem>>, %arg5: memref<128x128xf32, #tpu.memory_space<vmem>>, %arg6: memref<1x128xf32, #tpu.memory_space<vmem>>, %arg7: memref<16x128xf32, #tpu.memory_space<vmem>>, %arg8: memref<16x128xf32, #tpu.memory_space<vmem>>) attributes {dimension_semantics = [#tpu.dimension_semantics<parallel>, #tpu.dimension_semantics<arbitrary>], iteration_bounds = array<i64: 1, 1>, scalar_prefetch = 0 : i64, scratch_operands = 1 : i64, tpu.core_type = #tpu.core_type<tc>, window_params = [{transform_indices = @transform_0, window_bounds = array<i64: 16, 128>}, {transform_indices = @transform_1, window_bounds = array<i64: 128, 128>}, {transform_indices = @transform_2, window_bounds = array<i64: 1, 128>}, {transform_indices = @transform_3, window_bounds = array<i64: 128, 128>}, {pipeline_mode = #tpu.pipeline_mode<synchronous>, transform_indices = @transform_4, window_bounds = array<i64: 1, 128>}, {transform_indices = @transform_5, window_bounds = array<i64: 16, 128>}]} {
    %c0_i32 = arith.constant 0 : i32
    %0 = arith.cmpi eq, %arg1, %c0_i32 : i32
    %1 = arith.extui %0 : i1 to i32
    %c0_i32_0 = arith.constant 0 : i32
    %2 = arith.cmpi ne, %1, %c0_i32_0 : i32
    scf.if %2 {
      %cst_19 = arith.constant 0.000000e+00 : f32
      %30 = vector.broadcast %cst_19 : f32 to vector<16x128xf32>
      %c0_20 = arith.constant 0 : index
      %c0_21 = arith.constant 0 : index
      %31 = vector.load %arg8[%c0_20, %c0_21] : memref<16x128xf32, #tpu.memory_space<vmem>>, vector<16x128xf32>
      tpu.vector_store %arg8[%c0_20, %c0_21], %30 {strides = array<i32>} : memref<16x128xf32, #tpu.memory_space<vmem>>, vector<16x128xf32>,
    } else {
    }
    %c0 = arith.constant 0 : index
    %c0_1 = arith.constant 0 : index
    %3 = vector.load %arg2[%c0, %c0_1] : memref<16x128xf32, #tpu.memory_space<vmem>>, vector<16x128xf32>
    %c0_2 = arith.constant 0 : index
    %c0_3 = arith.constant 0 : index
    %4 = vector.load %arg3[%c0_2, %c0_3] : memref<128x128xf32, #tpu.memory_space<vmem>>, vector<128x128xf32>
    %cst = arith.constant dense<0.000000e+00> : vector<16x128xf32>
    %5 = tpu.matmul %3, %4, %cst {dimension_numbers = #tpu.dot_dimension_numbers<[1], [0], [0], [1], [0, 0, 1, 1], [], []>} : vector<16x128xf32>, vector<128x128xf32>, vector<16x128xf32> -> vector<16x128xf32>
    %c0_4 = arith.constant 0 : index
    %c0_5 = arith.constant 0 : index
    %6 = vector.load %arg4[%c0_4, %c0_5] : memref<1x128xf32, #tpu.memory_space<vmem>>, vector<1x128xf32>
    %7 = vector.broadcast %6 : vector<1x128xf32> to vector<16x128xf32>
    %8 = arith.addf %5, %7 : vector<16x128xf32>
    %cst_6 = arith.constant 5.000000e-01 : f32
    %9 = vector.broadcast %cst_6 : f32 to vector<16x128xf32>
    %10 = arith.mulf %9, %8 : vector<16x128xf32>
    %cst_7 = arith.constant 4.471500e-02 : f32
    %11 = vector.broadcast %cst_7 : f32 to vector<16x128xf32>
    %12 = arith.mulf %11, %8 : vector<16x128xf32>
    %13 = arith.mulf %12, %8 : vector<16x128xf32>
    %14 = arith.mulf %13, %8 : vector<16x128xf32>
    %15 = arith.addf %8, %14 : vector<16x128xf32>
    %cst_8 = arith.constant 0.797884583 : f32
    %16 = vector.broadcast %cst_8 : f32 to vector<16x128xf32>
    %17 = arith.mulf %16, %15 : vector<16x128xf32>
    %18 = math.tanh %17 : vector<16x128xf32>
    %cst_9 = arith.constant 1.000000e+00 : f32
    %19 = vector.broadcast %cst_9 : f32 to vector<16x128xf32>
    %20 = arith.addf %19, %18 : vector<16x128xf32>
    %21 = arith.mulf %10, %20 : vector<16x128xf32>
    %c0_10 = arith.constant 0 : index
    %c0_11 = arith.constant 0 : index
    %22 = vector.load %arg8[%c0_10, %c0_11] : memref<16x128xf32, #tpu.memory_space<vmem>>, vector<16x128xf32>
    %c0_12 = arith.constant 0 : index
    %c0_13 = arith.constant 0 : index
    %23 = vector.load %arg5[%c0_12, %c0_13] : memref<128x128xf32, #tpu.memory_space<vmem>>, vector<128x128xf32>
    %cst_14 = arith.constant dense<0.000000e+00> : vector<16x128xf32>
    %24 = tpu.matmul %21, %23, %cst_14 {dimension_numbers = #tpu.dot_dimension_numbers<[1], [0], [0], [1], [0, 0, 1, 1], [], []>} : vector<16x128xf32>, vector<128x128xf32>, vector<16x128xf32> -> vector<16x128xf32>
    %25 = arith.addf %22, %24 : vector<16x128xf32>
    %c0_15 = arith.constant 0 : index
    %c0_16 = arith.constant 0 : index
    %26 = vector.load %arg8[%c0_15, %c0_16] : memref<16x128xf32, #tpu.memory_space<vmem>>, vector<16x128xf32>
    tpu.vector_store %arg8[%c0_15, %c0_16], %25 {strides = array<i32>} : memref<16x128xf32, #tpu.memory_space<vmem>>, vector<16x128xf32>,
    %c0_i32_17 = arith.constant 0 : i32
    %27 = arith.cmpi eq, %arg1, %c0_i32_17 : i32
    %28 = arith.extui %27 : i1 to i32
    %c0_i32_18 = arith.constant 0 : i32
    %29 = arith.cmpi ne, %28, %c0_i32_18 : i32
    scf.if %29 {
      %c0_19 = arith.constant 0 : index
      %c0_20 = arith.constant 0 : index
      %30 = vector.load %arg8[%c0_19, %c0_20] : memref<16x128xf32, #tpu.memory_space<vmem>>, vector<16x128xf32>
      %c0_21 = arith.constant 0 : index
      %c0_22 = arith.constant 0 : index
      %31 = vector.load %arg6[%c0_21, %c0_22] : memref<1x128xf32, #tpu.memory_space<vmem>>, vector<1x128xf32>
      %32 = vector.broadcast %31 : vector<1x128xf32> to vector<16x128xf32>
      %33 = arith.addf %30, %32 : vector<16x128xf32>
      %c0_23 = arith.constant 0 : index
      %c0_24 = arith.constant 0 : index
      %34 = vector.load %arg7[%c0_23, %c0_24] : memref<16x128xf32, #tpu.memory_space<vmem>>, vector<16x128xf32>
      tpu.vector_store %arg7[%c0_23, %c0_24], %33 {strides = array<i32>} : memref<16x128xf32, #tpu.memory_space<vmem>>, vector<16x128xf32>,
    } else {
    }
    return
  }
  func.func @transform_0(%arg0: i32, %arg1: i32) -> (i32, i32) {
    %c0_i32 = arith.constant 0 : i32
    %c0_i32_0 = arith.constant 0 : i32
    return %arg0, %c0_i32 : i32, i32
  }
  func.func @transform_1(%arg0: i32, %arg1: i32) -> (i32, i32) {
    %c0_i32 = arith.constant 0 : i32
    %c0_i32_0 = arith.constant 0 : i32
    return %c0_i32, %arg1 : i32, i32
  }
  func.func @transform_2(%arg0: i32, %arg1: i32) -> (i32, i32) {
    %c0_i32 = arith.constant 0 : i32
    %c0_i32_0 = arith.constant 0 : i32
    return %c0_i32, %arg1 : i32, i32
  }
  func.func @transform_3(%arg0: i32, %arg1: i32) -> (i32, i32) {
    %c0_i32 = arith.constant 0 : i32
    %c0_i32_0 = arith.constant 0 : i32
    return %arg1, %c0_i32 : i32, i32
  }
  func.func @transform_4(%arg0: i32, %arg1: i32) -> (i32, i32) {
    %c0_i32 = arith.constant 0 : i32
    %c0_i32_0 = arith.constant 0 : i32
    %c0_i32_1 = arith.constant 0 : i32
    return %c0_i32, %c0_i32_0 : i32, i32
  }
  func.func @transform_5(%arg0: i32, %arg1: i32) -> (i32, i32) {
    %c0_i32 = arith.constant 0 : i32
    %c0_i32_0 = arith.constant 0 : i32
    return %arg0, %c0_i32 : i32, i32
  }
}

</mosaic_0001>

<bundles_post_ra>
// kernel: tpu_custom_call.1
= control target key start
LH: loop header
LB: loop body
LE: loop exit
PB: predicated region body
PF: predicated region fallthrough
CT: control target
= control target key end

     0   :  { %10 = vsyncpa [#allocation4], 0  ;;  %s587_s0 = inlined_call_operand.hbm [shape: f32[16,128], index: 0, kind: input, shape index: {}]   ;;  %s588_s1 = inlined_call_operand.hbm [shape: f32[128,128], index: 1, kind: input, shape index: {}]   ;;  %s589_s2 = inlined_call_operand.vmem [shape: f32[1,128], index: 2, kind: input, shape index: {}]   ;;  %s590_s3 = inlined_call_operand.hbm [shape: f32[128,128], index: 3, kind: input, shape index: {}]   ;;  %s591_s4 = inlined_call_operand.vmem [shape: f32[1,128], index: 4, kind: input, shape index: {}]   ;;  %s592_s5 = inlined_call_operand.hbm [shape: f32[16,128], index: 5, kind: output, shape index: {}]  }
   0x1   :  { %11 = vsyncpa [#allocation7], 0 }
   0x2   :  { %12 = vsyncpa [#allocation5], 0  ;;  %s521_s18 = smov [#allocation6]   ;;  %s522_s20 = smov [#allocation3]  }
   0x3   :  { %s30_s19 = sshll.u32 %s521_s18, 4  ;;  %s18_s21 = sshll.u32 %s522_s20, 4  ;;  %s31_s19 = int_to_ptr.vmem [resolvable:$true] %s30_s19  ;;  %s19_s21 = int_to_ptr.vmem [resolvable:$true] %s18_s21 }
   0x4   :  { %s443_s22 = scalar_lea.vmem %s31_s19, 2048  ;;  %p448_p1 = scmp.lt.s32.totalorder %s31_s19, %s31_s19 }
   0x5   :  { %p444_p0 = scmp.ne.s32.totalorder %s31_s19, %s443_s22  ;;  %p449_p2 = scmp.lt.s32.totalorder %s443_s22, %s443_s22 }
   0x7   :  { %p450_p3 = por %p449_p2, %p448_p1 }
   0x9   :  { %p451_p4 = pnand %p450_p3, %p444_p0 }
   0xb   :  { %454 = shalt.err (!%p451_p4)
}
   0xc   :  { %s523_s23 = smov 128   ;;  %s524_s24 = smov 8  }
   0xd   :  { %36 = dma.hbm_to_vmem [thread:$0]  %s588_s1, 2048, %s31_s19, [#allocation7], %s523_s23, %s523_s23, %s524_s24  }
   0xe   :  { %s463_s27 = scalar_lea.vmem %s19_s21, 256  ;;  %p468_p6 = scmp.lt.s32.totalorder %s19_s21, %s19_s21 }
   0xf   :  { %p464_p5 = scmp.ne.s32.totalorder %s19_s21, %s463_s27  ;;  %p469_p7 = scmp.lt.s32.totalorder %s463_s27, %s463_s27 }
  0x11   :  { %p470_p8 = por %p469_p7, %p468_p6 }
  0x13   :  { %p471_p9 = pnand %p470_p8, %p464_p5 }
  0x15   :  { %474 = shalt.err (!%p471_p9)
}
  0x16   :  { %24 = dma.hbm_to_vmem [thread:$0]  %s587_s0, 256, %s19_s21, [#allocation4], %s523_s23, %s523_s23, %s524_s24  }
  0x17   :  { %s525_s30 = smov [#allocation8]  }
  0x18   :  { %s44_s6 = sshll.u32 %s525_s30, 4  ;;  %s45_s6 = int_to_ptr.vmem [resolvable:$true] %s44_s6 }
  0x19   :  { %s483_s7 = scalar_lea.vmem %s45_s6, 2048  ;;  %p488_p11 = scmp.lt.s32.totalorder %s45_s6, %s45_s6 }
  0x1a   :  { %p484_p10 = scmp.ne.s32.totalorder %s45_s6, %s483_s7  ;;  %p489_p12 = scmp.lt.s32.totalorder %s483_s7, %s483_s7 }
  0x1c   :  { %p490_p13 = por %p489_p12, %p488_p11 }
  0x1e   :  { %p491_p0 = pnand %p490_p13, %p484_p10 }
  0x20   :  { %494 = shalt.err (!%p491_p0)
}
  0x21   :  { %50 = dma.hbm_to_vmem [thread:$0]  %s590_s3, 2048, %s45_s6, [#allocation7], %s523_s23, %s523_s23, %s524_s24  }
  0x22   :  { %515 = dma.done.wait [#allocation4], 256  }
  0x23   :  { %516 = vsyncadd [#allocation4], 4294967040 }
  0x24   :  { %517 = dma.done.wait [#allocation7], 4096  }
  0x25   :  { %518 = vsyncadd [#allocation7], 4294963200  ;;  %v85_v0 = vld [vmem:[#allocation6 + $0x78] sm:$0xff]  ;;  %v84_v1 = vld [vmem:[#allocation6 + $0x70] sm:$0xff]  ;;  %s526_s10 = smov [#allocation9]  }
  0x26   :  { %355 = vmatprep.subr.mxu0 %v85_v0  ;;  %v83_v2 = vld [vmem:[#allocation6 + $0x68] sm:$0xff]  ;;  %v82_v3 = vld [vmem:[#allocation6 + $0x60] sm:$0xff]  ;;  %v68_v4 = vld [vmem:[#allocation3] sm:$0xff]  ;;  %s304_s11 = sshll.u32 %s526_s10, 4  ;;  %s305_s11 = int_to_ptr.vmem [resolvable:$true] %s304_s11 }
  0x27   :  { %356 = vmatpush3.msra.mxu0 %v85_v0  ;;  %v81_v5 = vld [vmem:[#allocation6 + $0x58] sm:$0xff]  ;;  %387 = vmatprep.mubr.f32.mxu0 %v68_v4  ;;  %v80_v6 = vld [vmem:[#allocation6 + $0x50] sm:$0xff]  ;;  %v79_v7 = vld [vmem:[#allocation6 + $0x48] sm:$0xff]  ;;  %s495_s12 = scalar_lea.vmem %s305_s11, 256  ;;  %p500_p2 = scmp.lt.s32.totalorder %s305_s11, %s305_s11 }
  0x28   :  { %357 = vmatprep.subr.mxu0 %v84_v1  ;;  %v78_v8 = vld [vmem:[#allocation6 + $0x40] sm:$0xff]  ;;  %v77_v9 = vld [vmem:[#allocation6 + $0x38] sm:$0xff]  ;;  %v76_v10 = vld [vmem:[#allocation6 + $0x30] sm:$0xff]  ;;  %p496_p1 = scmp.ne.s32.totalorder %s305_s11, %s495_s12  ;;  %p501_p3 = scmp.lt.s32.totalorder %s495_s12, %s495_s12 }
  0x29   :  { %358 = vmatpush3.msra.mxu0 %v84_v1  ;;  %v75_v11 = vld [vmem:[#allocation6 + $0x28] sm:$0xff]  ;;  %v74_v12 = vld [vmem:[#allocation6 + $0x20] sm:$0xff]  ;;  %v73_v13 = vld [vmem:[#allocation6 + $0x18] sm:$0xff] }
  0x2a   :  { %359 = vmatprep.subr.mxu0 %v83_v2  ;;  %v72_v14 = vld [vmem:[#allocation6 + $0x10] sm:$0xff]  ;;  %v71_v15 = vld [vmem:[#allocation6 + $0x8] sm:$0xff]  ;;  %v70_v16 = vld [vmem:[#allocation6] sm:$0xff]  ;;  %p502_p4 = por %p501_p3, %p500_p2 }
  0x2b   :  { %360 = vmatpush3.msra.mxu0 %v83_v2  ;;  %v69_v17 = vld [vmem:[#allocation3 + $0x8] sm:$0xff]  ;;  %v202_v19 = vld [vmem:[#allocation8 + $0x70] sm:$0xff]  ;;  %v201_v20 = vld [vmem:[#allocation8 + $0x68] sm:$0xff] }
  0x2c   :  { %361 = vmatprep.subr.mxu0 %v82_v3  ;;  %v203_v18 = vld [vmem:[#allocation8 + $0x78] sm:$0xff]  ;;  %v200_v21 = vld [vmem:[#allocation8 + $0x60] sm:$0xff]  ;;  %v198_v23 = vld [vmem:[#allocation8 + $0x50] sm:$0xff]  ;;  %p503_p5 = pnand %p502_p4, %p496_p1 }
  0x2d   :  { %362 = vmatpush3.msra.mxu0 %v82_v3  ;;  %390 = vmatprep.subr.mxu1 %v203_v18  ;;  %v199_v22 = vld [vmem:[#allocation8 + $0x58] sm:$0xff]  ;;  %v197_v24 = vld [vmem:[#allocation8 + $0x48] sm:$0xff]  ;;  %v196_v25 = vld [vmem:[#allocation8 + $0x40] sm:$0xff] }
  0x2e   :  { %363 = vmatprep.subr.mxu0 %v81_v5  ;;  %391 = vmatpush3.msra.mxu1 %v203_v18  ;;  %v195_v26 = vld [vmem:[#allocation8 + $0x38] sm:$0xff]  ;;  %v194_v27 = vld [vmem:[#allocation8 + $0x30] sm:$0xff]  ;;  %v193_v28 = vld [vmem:[#allocation8 + $0x28] sm:$0xff] }
  0x2f   :  { %364 = vmatpush3.msra.mxu0 %v81_v5  ;;  %392 = vmatprep.subr.mxu1 %v202_v19  ;;  %v192_v29 = vld [vmem:[#allocation8 + $0x20] sm:$0xff]  ;;  %v191_v30 = vld [vmem:[#allocation8 + $0x18] sm:$0xff]  ;;  %v190_v31 = vld [vmem:[#allocation8 + $0x10] sm:$0xff] }
  0x30   :  { %365 = vmatprep.subr.mxu0 %v80_v6  ;;  %393 = vmatpush3.msra.mxu1 %v202_v19  ;;  %v189_v32 = vld [vmem:[#allocation8 + $0x8] sm:$0xff]  ;;  %v188_v33 = vld [vmem:[#allocation8] sm:$0xff]  ;;  %v317_v34 = vld [vmem:[%s589_s2] ss:$0 sm:$0xff] }
  0x31   :  { %366 = vmatpush3.msra.mxu0 %v80_v6  ;;  %394 = vmatprep.subr.mxu1 %v201_v20  ;;  %v318_v57 = vld [vmem:[%s591_s4] ss:$0 sm:$0xff] }
  0x32   :  { %367 = vmatprep.subr.mxu0 %v79_v7  ;;  %395 = vmatpush3.msra.mxu1 %v201_v20 }
  0x33   :  { %368 = vmatpush3.msra.mxu0 %v79_v7  ;;  %396 = vmatprep.subr.mxu1 %v200_v21 }
  0x34   :  { %369 = vmatprep.subr.mxu0 %v78_v8  ;;  %397 = vmatpush3.msra.mxu1 %v200_v21 }
  0x35   :  { %370 = vmatpush3.msra.mxu0 %v78_v8  ;;  %398 = vmatprep.subr.mxu1 %v199_v22 }
  0x36   :  { %371 = vmatprep.subr.mxu0 %v77_v9  ;;  %399 = vmatpush3.msra.mxu1 %v199_v22 }
  0x37   :  { %372 = vmatpush3.msra.mxu0 %v77_v9  ;;  %400 = vmatprep.subr.mxu1 %v198_v23 }
  0x38   :  { %373 = vmatprep.subr.mxu0 %v76_v10  ;;  %401 = vmatpush3.msra.mxu1 %v198_v23 }
  0x39   :  { %374 = vmatpush3.msra.mxu0 %v76_v10  ;;  %402 = vmatprep.subr.mxu1 %v197_v24 }
  0x3a   :  { %375 = vmatprep.subr.mxu0 %v75_v11  ;;  %403 = vmatpush3.msra.mxu1 %v197_v24 }
  0x3b   :  { %376 = vmatpush3.msra.mxu0 %v75_v11  ;;  %404 = vmatprep.subr.mxu1 %v196_v25 }
  0x3c   :  { %377 = vmatprep.subr.mxu0 %v74_v12  ;;  %405 = vmatpush3.msra.mxu1 %v196_v25 }
  0x3d   :  { %378 = vmatpush3.msra.mxu0 %v74_v12  ;;  %406 = vmatprep.subr.mxu1 %v195_v26 }
  0x3e   :  { %379 = vmatprep.subr.mxu0 %v73_v13  ;;  %407 = vmatpush3.msra.mxu1 %v195_v26 }
  0x3f   :  { %380 = vmatpush3.msra.mxu0 %v73_v13  ;;  %408 = vmatprep.subr.mxu1 %v194_v27 }
  0x40   :  { %381 = vmatprep.subr.mxu0 %v72_v14  ;;  %409 = vmatpush3.msra.mxu1 %v194_v27 }
  0x41   :  { %382 = vmatpush3.msra.mxu0 %v72_v14  ;;  %410 = vmatprep.subr.mxu1 %v193_v28 }
  0x42   :  { %383 = vmatprep.subr.mxu0 %v71_v15  ;;  %411 = vmatpush3.msra.mxu1 %v193_v28 }
  0x43   :  { %384 = vmatpush3.msra.mxu0 %v71_v15  ;;  %412 = vmatprep.subr.mxu1 %v192_v29 }
  0x44   :  { %385 = vmatprep.subr.mxu0 %v70_v16  ;;  %413 = vmatpush3.msra.mxu1 %v192_v29 }
  0x45   :  { %386 = vmatpush3.msra.mxu0 %v70_v16  ;;  %414 = vmatprep.subr.mxu1 %v191_v30 }
  0x46   :  { %388 = vmatmul.mubr.f32.vlgmr.msra.gmra.mxu0 %v69_v17  ;;  %415 = vmatpush3.msra.mxu1 %v191_v30 }
  0x47   :  { %416 = vmatprep.subr.mxu1 %v190_v31 }
  0x48   :  { %417 = vmatpush3.msra.mxu1 %v190_v31 }
  0x49   :  { %418 = vmatprep.subr.mxu1 %v189_v32 }
  0x4a   :  { %419 = vmatpush3.msra.mxu1 %v189_v32 }
  0x4b   :  { %420 = vmatprep.subr.mxu1 %v188_v33 }
  0x4c   :  { %421 = vmatpush3.msra.mxu1 %v188_v33 }
 0x106   :  { %v389_v35 = vpop.f32.mrf.mxu0 }
 0x107   :  { %v165_v36 = vadd.f32 %v389_v35, %v317_v34 }
 0x108   :  { %v159_v37 = vpop.f32.mrf.mxu0 }
 0x109   :  { %v171_v38 = vmul.f32 0.044715, %v165_v36  ;;  %v160_v39 = vadd.f32 %v317_v34, %v159_v37  ;;  %v169_v54 = vmul.f32 0.5, %v165_v36 }
 0x10b   :  { %v173_v40 = vmul.f32 %v171_v38, %v165_v36  ;;  %v170_v41 = vmul.f32 0.044715, %v160_v39  ;;  %v168_v52 = vmul.f32 0.5, %v160_v39 }
 0x10d   :  { %v172_v42 = vmul.f32 %v170_v41, %v160_v39  ;;  %v175_v43 = vmul.f32 %v173_v40, %v165_v36 }
 0x10f   :  { %v174_v44 = vmul.f32 %v172_v42, %v160_v39  ;;  %v177_v45 = vadd.f32 %v175_v43, %v165_v36 }
 0x111   :  { %v176_v46 = vadd.f32 %v174_v44, %v160_v39  ;;  %v179_v47 = vmul.f32 0.7978846, %v177_v45 }
 0x113   :  { %v178_v48 = vmul.f32 0.7978846, %v176_v46  ;;  %431 = vtanh.f32 %v179_v47 }
 0x115   :  { %433 = vtanh.f32 %v178_v48 }
 0x120   :  { %v432_v49 = vpop.eup %431 }
 0x121   :  { %v183_v51 = vadd.f32 1.0, %v432_v49 }
 0x122   :  { %v434_v50 = vpop.eup %433 }
 0x123   :  { %v182_v53 = vadd.f32 1.0, %v434_v50  ;;  %v185_v56 = vmul.f32 %v183_v51, %v169_v54 }
 0x125   :  { %v184_v55 = vmul.f32 %v182_v53, %v168_v52 }
 0x127   :  { %422 = vmatprep.mubr.f32.mxu1 %v184_v55 }
 0x128   :  { %423 = vmatmul.mubr.f32.vlgmr.msra.gmra.mxu1 %v185_v56 }
 0x1e8   :  { %v424_v58 = vpop.f32.mrf.mxu1 }
 0x1e9   :  { %v296_v59 = vadd.f32 %v424_v58, %v318_v57 }
 0x1ea   :  { %v270_v60 = vpop.f32.mrf.mxu1 }
 0x1eb   :  { %298 = vst [vmem:[#allocation9 + $0x8] sm:$0xff] %v296_v59  ;;  %v295_v61 = vadd.f32 %v318_v57, %v270_v60 }
 0x1ed   :  { %297 = vst [vmem:[#allocation9] sm:$0xff] %v295_v61 }
 0x1ee   :  { %506 = shalt.err (!%p503_p5)
}
 0x1ef   :  { %310 = dma.vmem_to_hbm [thread:$0]  %s305_s11, 256, %s592_s5, [#allocation5], %s523_s23, %s523_s23, %s524_s24  }
 0x1f0   :  { %519 = dma.done.wait [#allocation5], 256  }
 0x1f1   :  { %520 = vsyncadd [#allocation5], 4294967040 }
 0x1f2   :  { %314 = vsyncpa [#allocation4], 1 }
 0x1f3   :  { %315 = vsyncpa [#allocation7], 1 }
 0x1f4   :  { %316 = vsyncpa [#allocation5], 1 }

</bundles_post_ra>
